<compile_context>
chip_gen: v7x
topology: tpu7x:2x2x1
jax: 0.10.0
libtpu: 0.0.40
codegen_flags: <defaults>
</compile_context>

<pallas_src>
import jax
import jax.numpy as jnp
from jax.experimental import pallas as pl
from jax.experimental.pallas import tpu as pltpu

_LANES = 128


def _tensorcores_per_chip():
    """2 TensorCores per chip only on v7x; v5e/v6e expose 1 TC per device."""
    try:
        kind = jax.devices()[0].device_kind.lower()
    except Exception:
        return 1
    return 2 if "v7" in kind else 1


def _combined_loss_jnp(x, t, w_focal, w_dice, alpha, gamma, smooth):
    """Plain-jnp reference / tiny-input fast path (identical math)."""
    x = x.astype(jnp.float32).reshape(-1)
    t = t.astype(jnp.float32).reshape(-1)
    bce = jnp.mean(jnp.maximum(x, 0.0) - x * t + jnp.log1p(jnp.exp(-jnp.abs(x))))
    focal = alpha * (1.0 - jnp.exp(-bce)) ** gamma * bce
    sig = jax.nn.sigmoid(x)
    inter = jnp.sum(sig * t)
    dice = 1.0 - (2.0 * inter + smooth) / (jnp.sum(sig) + jnp.sum(t) + smooth)
    return w_focal * focal + w_dice * dice


def _make_loss_sums_kernel(n, block_rows, steps_per_split):
    """Kernel accumulating (8,128) partial sums of [bce, sig*t, sig, t].

    Resident output block per split: (4, 8, 128) f32.  The valid element
    count `n` and all tile sizes are static, so they are closure constants.
    """
    n_full_rows = n // _LANES     # rows whose 128 lanes are all valid
    n_rem = n % _LANES            # valid lanes in the single partial row
    r8 = block_rows // 8

    def kernel(x_ref, t_ref, out_ref):
        c = pl.program_id(0)
        i = pl.program_id(1)

        @pl.when(i == 0)
        def _():
            out_ref[...] = jnp.zeros_like(out_ref)

        row_start = (c * steps_per_split + i) * block_rows

        x = x_ref[...].astype(jnp.float32)
        t = t_ref[...].astype(jnp.float32)

        def accumulate(x, t, vf=None):
            # One shared EUP exp between stable sigmoid and BCE-with-logits.
            z = jnp.exp(-jnp.abs(x))
            inv = 1.0 / (1.0 + z)
            # TODO(synk): on v7x, if the bundle shows VALU binding, move this
            # divide to the EUP via pl.reciprocal(1.0 + z, approx=True)
            # (~1e-4 rel error); if EUP binds, keep it on the VALU as is.
            sig = jnp.where(x >= 0.0, inv, z * inv)      # stable sigmoid
            bce = jnp.maximum(x, 0.0) - x * t + jnp.log1p(z)
            if vf is not None:                           # exact tail masking
                bce = bce * vf
                sig = sig * vf
                t = t * vf

            def part(v):                                 # vreg-wise partials
                return jnp.sum(v.reshape(r8, 8, _LANES), axis=0)

            out_ref[...] += jnp.stack(
                [part(bce), part(sig * t), part(sig), part(t)], axis=0)

        # Only the block straddling the valid/invalid boundary (plus the at
        # most one logically-out-of-range duplicate block produced by an odd
        # total block count split 2 ways) pays for the mask.
        tail = row_start + block_rows > n_full_rows

        @pl.when(jnp.logical_not(tail))
        def _():
            accumulate(x, t)

        @pl.when(tail)
        def _():
            rows_i = row_start + jax.lax.broadcasted_iota(jnp.int32, x.shape, 0)
            lanes_i = jax.lax.broadcasted_iota(jnp.int32, x.shape, 1)
            valid = (rows_i < n_full_rows) | (
                (rows_i == n_full_rows) & (lanes_i < n_rem))
            vf = valid.astype(jnp.float32)
            # Sanitize first so garbage (possibly NaN/Inf) in the ragged part
            # of the block never reaches the arithmetic; masked elements then
            # contribute exactly zero.
            accumulate(jnp.where(valid, x, 0.0), jnp.where(valid, t, 0.0), vf)

    return kernel


def combined_loss(inputs, targets, *, w_focal=20.0, w_dice=1.0,
                  alpha=0.8, gamma=2.0, smooth=1.0,
                  block_rows=None, num_splits=None,
                  core_parallel_split=False,
                  min_kernel_elements=1 << 18):
    """JAX/Pallas equivalent of CombinedLoss(w_focal=20, w_dice=1).forward."""
    n = inputs.size

    # Tiny inputs: kernel launch + tail handling dominates; plain jnp is faster.
    if n < min_kernel_elements:
        return _combined_loss_jnp(inputs, targets, w_focal, w_dice,
                                  alpha, gamma, smooth)

    if num_splits is None:
        num_splits = _tensorcores_per_chip()
    if block_rows is None:
        # ~512 KiB / stream / step for f32; keep the byte budget for bf16/int8.
        block_rows = 1024 if inputs.dtype.itemsize >= 4 else 2048

    # Stream both tensors in their native dtypes (cast to f32 in-kernel), so
    # bf16 / int8 targets get the HBM-bandwidth win with no wrapper-side copy.
    x = inputs.reshape(-1)
    t = targets.reshape(-1)

    rem = n % _LANES
    if rem:
        # Only remaining fallback copy: round up to a whole 128-lane row so
        # the 2-D reshape is legal.  Pad values are irrelevant (masked).
        x = jnp.pad(x, (0, _LANES - rem))
        t = jnp.pad(t, (0, _LANES - rem))
    rows = x.size // _LANES

    # Shrink the tile for small inputs (multiple of 32 sublanes keeps packed
    # dtypes on legal tiling); never exceed the requested block_rows.
    per_split_rows = -(-rows // num_splits)
    eff_block_rows = min(block_rows, max(32, -(-per_split_rows // 32) * 32))

    total_blocks = -(-rows // eff_block_rows)
    if total_blocks < num_splits:
        num_splits = 1
    steps_per_split = -(-total_blocks // num_splits)
    last_block = total_blocks - 1

    x2 = x.reshape(rows, _LANES)
    t2 = t.reshape(rows, _LANES)

    # Clamp so no block *starts* past the end of the array; logically-duplicate
    # blocks (odd total_blocks with 2 splits) are fully masked in-kernel.
    def in_index(c, i):
        return (jnp.minimum(c * steps_per_split + i, last_block), 0)

    in_spec = pl.BlockSpec((eff_block_rows, _LANES), in_index)
    out_spec = pl.BlockSpec((None, 4, 8, _LANES), lambda c, i: (c, 0, 0, 0))

    if core_parallel_split and num_splits > 1:
        # TODO(synk): verify on a v7x profile that this shards the split axis
        # across both TensorCores; plain "parallel" is the safe default.
        dim_sems = (pltpu.CORE_PARALLEL, pltpu.ARBITRARY)
    else:
        dim_sems = ("parallel", "arbitrary")

    kernel = _make_loss_sums_kernel(n, eff_block_rows, steps_per_split)

    bytes_accessed = (x2.size * x2.dtype.itemsize +
                      t2.size * t2.dtype.itemsize +
                      num_splits * 4 * 8 * _LANES * 4)
    cost = pl.CostEstimate(flops=14 * n, transcendentals=2 * n,
                           bytes_accessed=bytes_accessed)

    partials = pl.pallas_call(
        kernel,
        out_shape=jax.ShapeDtypeStruct((num_splits, 4, 8, _LANES), jnp.float32),
        grid_spec=pltpu.PrefetchScalarGridSpec(
            num_scalar_prefetch=0,
            grid=(num_splits, steps_per_split),
            in_specs=[in_spec, in_spec],
            out_specs=out_spec,
        ),
        compiler_params=pltpu.CompilerParams(dimension_semantics=dim_sems),
        cost_estimate=cost,
    )(x2, t2)

    # Final tiny cross-lane/sublane/split reduce in plain JAX glue.
    sums = jnp.sum(partials, axis=(0, 2, 3))   # [sum_bce, I, sum_sig, sum_t]
    sum_bce, intersection, sum_sig, sum_t = sums[0], sums[1], sums[2], sums[3]

    # FocalLoss: BCE mean (over the ORIGINAL n) -> alpha*(1-exp(-BCE))**gamma*BCE
    bce_mean = sum_bce / jnp.float32(n)
    focal = alpha * (1.0 - jnp.exp(-bce_mean)) ** gamma * bce_mean

    # DiceLoss: 1 - (2*I + smooth) / (sum(sig) + sum(t) + smooth)
    dice = 1.0 - (2.0 * intersection + smooth) / (sum_sig + sum_t + smooth)

    return w_focal * focal + w_dice * dice


if __name__ == "__main__":
    key = jax.random.PRNGKey(0)
    k1, k2 = jax.random.split(key)

    # NCHW logits and binary targets, as the PyTorch module expects.
    inputs = jax.random.normal(k1, (2, 4, 16, 16), jnp.float32)
    targets = (jax.random.uniform(k2, (2, 4, 16, 16)) > 0.5).astype(jnp.float32)
    ref = _combined_loss_jnp(inputs, targets, 20.0, 1.0, 0.8, 2.0, 1.0)

    # 1) Force the Pallas kernel even at this tiny size (exercises the tail mask).
    loss = jax.block_until_ready(
        combined_loss(inputs, targets, min_kernel_elements=0))
    assert jnp.allclose(loss, ref, rtol=1e-5, atol=1e-5), (loss, ref)

    # 2) Default path (tiny-n fast path) must match as well.
    loss_fast = jax.block_until_ready(combined_loss(inputs, targets))
    assert jnp.allclose(loss_fast, ref, rtol=1e-5, atol=1e-5), (loss_fast, ref)

    # 3) Ragged size: n not a multiple of 128 (pad fallback + element tail mask).
    k3, k4 = jax.random.split(k1)
    x_r = jax.random.normal(k3, (3, 5, 37, 53), jnp.float32)          # n = 29415
    t_r = (jax.random.uniform(k4, x_r.shape) > 0.5).astype(jnp.float32)
    loss_r = jax.block_until_ready(
        combined_loss(x_r, t_r, min_kernel_elements=0))
    ref_r = _combined_loss_jnp(x_r, t_r, 20.0, 1.0, 0.8, 2.0, 1.0)
    assert jnp.allclose(loss_r, ref_r, rtol=1e-5, atol=1e-5), (loss_r, ref_r)

    # 4) n multiple of 128 but not of the block granularity (ragged last block).
    k5, k6 = jax.random.split(k2)
    x_b = jax.random.normal(k5, (8, 8, 72, 64), jnp.float32)          # n = 294912
    t_b = (jax.random.uniform(k6, x_b.shape) > 0.5).astype(jnp.float32)
    loss_b = jax.block_until_ready(
        combined_loss(x_b, t_b, min_kernel_elements=0))
    ref_b = _combined_loss_jnp(x_b, t_b, 20.0, 1.0, 0.8, 2.0, 1.0)
    assert jnp.allclose(loss_b, ref_b, rtol=1e-5, atol=1e-5), (loss_b, ref_b)

    print("KERNEL_OK")
</pallas_src>

<mosaic_0001>
module attributes {stable_mosaic.version = 11 : i64} {
  func.func @kernel(%arg0: i32, %arg1: i32, %arg2: memref<32x128xf32, #tpu.memory_space<vmem>>, %arg3: memref<32x128xf32, #tpu.memory_space<vmem>>, %arg4: memref<1x4x8x128xf32, #tpu.memory_space<vmem>>) attributes {dimension_semantics = [#tpu.dimension_semantics<parallel>, #tpu.dimension_semantics<arbitrary>], iteration_bounds = array<i64: 1, 1>, scalar_prefetch = 0 : i64, scratch_operands = 0 : i64, tpu.core_type = #tpu.core_type<tc>, window_params = [{transform_indices = @transform_0, window_bounds = array<i64: 32, 128>}, {transform_indices = @transform_1, window_bounds = array<i64: 32, 128>}, {transform_indices = @transform_2, window_bounds = array<i64: 1, 4, 8, 128>}]} {
    %c0_i32 = arith.constant 0 : i32
    %0 = arith.cmpi eq, %arg1, %c0_i32 : i32
    %1 = arith.extui %0 : i1 to i32
    %c0_i32_0 = arith.constant 0 : i32
    %2 = arith.cmpi ne, %1, %c0_i32_0 : i32
    scf.if %2 {
      %cst = arith.constant 0.000000e+00 : f32
      %15 = vector.broadcast %cst : f32 to vector<4x8x128xf32>
      %c0_7 = arith.constant 0 : index
      %c0_8 = arith.constant 0 : index
      %c0_9 = arith.constant 0 : index
      %c0_10 = arith.constant 0 : index
      %16 = vector.load %arg4[%c0_7, %c0_8, %c0_9, %c0_10] : memref<1x4x8x128xf32, #tpu.memory_space<vmem>>, vector<1x4x8x128xf32>
      %17 = vector.shape_cast %16 : vector<1x4x8x128xf32> to vector<4x8x128xf32>
      %18 = vector.shape_cast %15 : vector<4x8x128xf32> to vector<1x4x8x128xf32>
      tpu.vector_store %arg4[%c0_7, %c0_8, %c0_9, %c0_10], %18 {strides = array<i32>} : memref<1x4x8x128xf32, #tpu.memory_space<vmem>>, vector<1x4x8x128xf32>,
    } else {
    }
    %c1_i32 = arith.constant 1 : i32
    %3 = arith.muli %arg0, %c1_i32 : i32
    %4 = arith.addi %3, %arg1 : i32
    %c32_i32 = arith.constant 32 : i32
    %5 = arith.muli %4, %c32_i32 : i32
    %c0 = arith.constant 0 : index
    %c0_1 = arith.constant 0 : index
    %6 = vector.load %arg2[%c0, %c0_1] : memref<32x128xf32, #tpu.memory_space<vmem>>, vector<32x128xf32>
    %c0_2 = arith.constant 0 : index
    %c0_3 = arith.constant 0 : index
    %7 = vector.load %arg3[%c0_2, %c0_3] : memref<32x128xf32, #tpu.memory_space<vmem>>, vector<32x128xf32>
    %c32_i32_4 = arith.constant 32 : i32
    %8 = arith.addi %5, %c32_i32_4 : i32
    %c16_i32 = arith.constant 16 : i32
    %9 = arith.cmpi sgt, %8, %c16_i32 : i32
    %true = arith.constant true
    %10 = arith.xori %9, %true : i1
    %11 = arith.extui %10 : i1 to i32
    %c0_i32_5 = arith.constant 0 : i32
    %12 = arith.cmpi ne, %11, %c0_i32_5 : i32
    scf.if %12 {
      %15 = math.absf %6 : vector<32x128xf32>
      %cst = arith.constant 0.000000e+00 : f32
      %16 = vector.broadcast %cst : f32 to vector<32x128xf32>
      %17 = arith.subf %16, %15 : vector<32x128xf32>
      %18 = math.exp %17 : vector<32x128xf32>
      %cst_7 = arith.constant 1.000000e+00 : f32
      %19 = vector.broadcast %cst_7 : f32 to vector<32x128xf32>
      %20 = arith.addf %19, %18 : vector<32x128xf32>
      %cst_8 = arith.constant 1.000000e+00 : f32
      %21 = vector.broadcast %cst_8 : f32 to vector<32x128xf32>
      %22 = arith.divf %21, %20 : vector<32x128xf32>
      %cst_9 = arith.constant 0.000000e+00 : f32
      %23 = vector.broadcast %cst_9 : f32 to vector<32x128xf32>
      %24 = arith.cmpf oge, %6, %23 : vector<32x128xf32>
      %25 = arith.mulf %18, %22 : vector<32x128xf32>
      %26 = arith.select %24, %22, %25 : vector<32x128xi1>, vector<32x128xf32>
      %cst_10 = arith.constant 0.000000e+00 : f32
      %27 = vector.broadcast %cst_10 : f32 to vector<32x128xf32>
      %28 = arith.maximumf %6, %27 : vector<32x128xf32>
      %29 = arith.mulf %6, %7 : vector<32x128xf32>
      %30 = arith.subf %28, %29 : vector<32x128xf32>
      %31 = math.log1p %18 : vector<32x128xf32>
      %32 = arith.addf %30, %31 : vector<32x128xf32>
      %c0_11 = arith.constant 0 : index
      %c0_12 = arith.constant 0 : index
      %c0_13 = arith.constant 0 : index
      %c0_14 = arith.constant 0 : index
      %33 = vector.load %arg4[%c0_11, %c0_12, %c0_13, %c0_14] : memref<1x4x8x128xf32, #tpu.memory_space<vmem>>, vector<1x4x8x128xf32>
      %34 = vector.shape_cast %33 : vector<1x4x8x128xf32> to vector<4x8x128xf32>
      %35 = vector.shape_cast %32 : vector<32x128xf32> to vector<4x8x128xf32>
      %cst_15 = arith.constant dense<0.000000e+00> : vector<8x128xf32>
      %36 = vector.multi_reduction <add>, %35, %cst_15 [0] : vector<4x8x128xf32> to vector<8x128xf32>
      %37 = arith.mulf %26, %7 : vector<32x128xf32>
      %38 = vector.shape_cast %37 : vector<32x128xf32> to vector<4x8x128xf32>
      %cst_16 = arith.constant dense<0.000000e+00> : vector<8x128xf32>
      %39 = vector.multi_reduction <add>, %38, %cst_16 [0] : vector<4x8x128xf32> to vector<8x128xf32>
      %40 = vector.shape_cast %26 : vector<32x128xf32> to vector<4x8x128xf32>
      %cst_17 = arith.constant dense<0.000000e+00> : vector<8x128xf32>
      %41 = vector.multi_reduction <add>, %40, %cst_17 [0] : vector<4x8x128xf32> to vector<8x128xf32>
      %42 = vector.shape_cast %7 : vector<32x128xf32> to vector<4x8x128xf32>
      %cst_18 = arith.constant dense<0.000000e+00> : vector<8x128xf32>
      %43 = vector.multi_reduction <add>, %42, %cst_18 [0] : vector<4x8x128xf32> to vector<8x128xf32>
      %44 = vector.shape_cast %36 : vector<8x128xf32> to vector<1x8x128xf32>
      %45 = vector.shape_cast %39 : vector<8x128xf32> to vector<1x8x128xf32>
      %46 = vector.shape_cast %41 : vector<8x128xf32> to vector<1x8x128xf32>
      %47 = vector.shape_cast %43 : vector<8x128xf32> to vector<1x8x128xf32>
      %48 = tpu.concatenate %44, %45, %46, %47 in 0 : vector<1x8x128xf32>, vector<1x8x128xf32>, vector<1x8x128xf32>, vector<1x8x128xf32> -> vector<4x8x128xf32>
      %49 = arith.addf %34, %48 : vector<4x8x128xf32>
      %c0_19 = arith.constant 0 : index
      %c0_20 = arith.constant 0 : index
      %c0_21 = arith.constant 0 : index
      %c0_22 = arith.constant 0 : index
      %50 = vector.load %arg4[%c0_19, %c0_20, %c0_21, %c0_22] : memref<1x4x8x128xf32, #tpu.memory_space<vmem>>, vector<1x4x8x128xf32>
      %51 = vector.shape_cast %50 : vector<1x4x8x128xf32> to vector<4x8x128xf32>
      %52 = vector.shape_cast %49 : vector<4x8x128xf32> to vector<1x4x8x128xf32>
      tpu.vector_store %arg4[%c0_19, %c0_20, %c0_21, %c0_22], %52 {strides = array<i32>} : memref<1x4x8x128xf32, #tpu.memory_space<vmem>>, vector<1x4x8x128xf32>,
    } else {
    }
    %13 = arith.extui %9 : i1 to i32
    %c0_i32_6 = arith.constant 0 : i32
    %14 = arith.cmpi ne, %13, %c0_i32_6 : i32
    scf.if %14 {
      %15 = tpu.iota {dimensions = array<i32: 0>} : vector<32x128xi32>
      %16 = vector.broadcast %5 : i32 to vector<32x128xi32>
      %17 = arith.addi %16, %15 : vector<32x128xi32>
      %18 = tpu.iota {dimensions = array<i32: 1>} : vector<32x128xi32>
      %c16_i32_7 = arith.constant 16 : i32
      %19 = vector.broadcast %c16_i32_7 : i32 to vector<32x128xi32>
      %20 = arith.cmpi slt, %17, %19 : vector<32x128xi32>
      %c16_i32_8 = arith.constant 16 : i32
      %21 = vector.broadcast %c16_i32_8 : i32 to vector<32x128xi32>
      %22 = arith.cmpi eq, %17, %21 : vector<32x128xi32>
      %c0_i32_9 = arith.constant 0 : i32
      %23 = vector.broadcast %c0_i32_9 : i32 to vector<32x128xi32>
      %24 = arith.cmpi slt, %18, %23 : vector<32x128xi32>
      %25 = arith.andi %22, %24 : vector<32x128xi1>
      %26 = arith.ori %20, %25 : vector<32x128xi1>
      %27 = arith.extui %26 : vector<32x128xi1> to vector<32x128xi32>
      %28 = arith.sitofp %27 : vector<32x128xi32> to vector<32x128xf32>
      %cst = arith.constant 0.000000e+00 : f32
      %29 = vector.broadcast %cst : f32 to vector<32x128xf32>
      %30 = arith.select %26, %6, %29 : vector<32x128xi1>, vector<32x128xf32>
      %cst_10 = arith.constant 0.000000e+00 : f32
      %31 = vector.broadcast %cst_10 : f32 to vector<32x128xf32>
      %32 = arith.select %26, %7, %31 : vector<32x128xi1>, vector<32x128xf32>
      %33 = math.absf %30 : vector<32x128xf32>
      %cst_11 = arith.constant 0.000000e+00 : f32
      %34 = vector.broadcast %cst_11 : f32 to vector<32x128xf32>
      %35 = arith.subf %34, %33 : vector<32x128xf32>
      %36 = math.exp %35 : vector<32x128xf32>
      %cst_12 = arith.constant 1.000000e+00 : f32
      %37 = vector.broadcast %cst_12 : f32 to vector<32x128xf32>
      %38 = arith.addf %37, %36 : vector<32x128xf32>
      %cst_13 = arith.constant 1.000000e+00 : f32
      %39 = vector.broadcast %cst_13 : f32 to vector<32x128xf32>
      %40 = arith.divf %39, %38 : vector<32x128xf32>
      %cst_14 = arith.constant 0.000000e+00 : f32
      %41 = vector.broadcast %cst_14 : f32 to vector<32x128xf32>
      %42 = arith.cmpf oge, %30, %41 : vector<32x128xf32>
      %43 = arith.mulf %36, %40 : vector<32x128xf32>
      %44 = arith.select %42, %40, %43 : vector<32x128xi1>, vector<32x128xf32>
      %cst_15 = arith.constant 0.000000e+00 : f32
      %45 = vector.broadcast %cst_15 : f32 to vector<32x128xf32>
      %46 = arith.maximumf %30, %45 : vector<32x128xf32>
      %47 = arith.mulf %30, %32 : vector<32x128xf32>
      %48 = arith.subf %46, %47 : vector<32x128xf32>
      %49 = math.log1p %36 : vector<32x128xf32>
      %50 = arith.addf %48, %49 : vector<32x128xf32>
      %51 = arith.mulf %50, %28 : vector<32x128xf32>
      %52 = arith.mulf %44, %28 : vector<32x128xf32>
      %53 = arith.mulf %32, %28 : vector<32x128xf32>
      %c0_16 = arith.constant 0 : index
      %c0_17 = arith.constant 0 : index
      %c0_18 = arith.constant 0 : index
      %c0_19 = arith.constant 0 : index
      %54 = vector.load %arg4[%c0_16, %c0_17, %c0_18, %c0_19] : memref<1x4x8x128xf32, #tpu.memory_space<vmem>>, vector<1x4x8x128xf32>
      %55 = vector.shape_cast %54 : vector<1x4x8x128xf32> to vector<4x8x128xf32>
      %56 = vector.shape_cast %51 : vector<32x128xf32> to vector<4x8x128xf32>
      %cst_20 = arith.constant dense<0.000000e+00> : vector<8x128xf32>
      %57 = vector.multi_reduction <add>, %56, %cst_20 [0] : vector<4x8x128xf32> to vector<8x128xf32>
      %58 = arith.mulf %52, %53 : vector<32x128xf32>
      %59 = vector.shape_cast %58 : vector<32x128xf32> to vector<4x8x128xf32>
      %cst_21 = arith.constant dense<0.000000e+00> : vector<8x128xf32>
      %60 = vector.multi_reduction <add>, %59, %cst_21 [0] : vector<4x8x128xf32> to vector<8x128xf32>
      %61 = vector.shape_cast %52 : vector<32x128xf32> to vector<4x8x128xf32>
      %cst_22 = arith.constant dense<0.000000e+00> : vector<8x128xf32>
      %62 = vector.multi_reduction <add>, %61, %cst_22 [0] : vector<4x8x128xf32> to vector<8x128xf32>
      %63 = vector.shape_cast %53 : vector<32x128xf32> to vector<4x8x128xf32>
      %cst_23 = arith.constant dense<0.000000e+00> : vector<8x128xf32>
      %64 = vector.multi_reduction <add>, %63, %cst_23 [0] : vector<4x8x128xf32> to vector<8x128xf32>
      %65 = vector.shape_cast %57 : vector<8x128xf32> to vector<1x8x128xf32>
      %66 = vector.shape_cast %60 : vector<8x128xf32> to vector<1x8x128xf32>
      %67 = vector.shape_cast %62 : vector<8x128xf32> to vector<1x8x128xf32>
      %68 = vector.shape_cast %64 : vector<8x128xf32> to vector<1x8x128xf32>
      %69 = tpu.concatenate %65, %66, %67, %68 in 0 : vector<1x8x128xf32>, vector<1x8x128xf32>, vector<1x8x128xf32>, vector<1x8x128xf32> -> vector<4x8x128xf32>
      %70 = arith.addf %55, %69 : vector<4x8x128xf32>
      %c0_24 = arith.constant 0 : index
      %c0_25 = arith.constant 0 : index
      %c0_26 = arith.constant 0 : index
      %c0_27 = arith.constant 0 : index
      %71 = vector.load %arg4[%c0_24, %c0_25, %c0_26, %c0_27] : memref<1x4x8x128xf32, #tpu.memory_space<vmem>>, vector<1x4x8x128xf32>
      %72 = vector.shape_cast %71 : vector<1x4x8x128xf32> to vector<4x8x128xf32>
      %73 = vector.shape_cast %70 : vector<4x8x128xf32> to vector<1x4x8x128xf32>
      tpu.vector_store %arg4[%c0_24, %c0_25, %c0_26, %c0_27], %73 {strides = array<i32>} : memref<1x4x8x128xf32, #tpu.memory_space<vmem>>, vector<1x4x8x128xf32>,
    } else {
    }
    return
  }
  func.func @transform_0(%arg0: i32, %arg1: i32) -> (i32, i32) {
    %c1_i32 = arith.constant 1 : i32
    %0 = arith.muli %arg0, %c1_i32 : i32
    %1 = arith.addi %0, %arg1 : i32
    %c0_i32 = arith.constant 0 : i32
    %2 = arith.minsi %1, %c0_i32 : i32
    %c0_i32_0 = arith.constant 0 : i32
    %c0_i32_1 = arith.constant 0 : i32
    return %2, %c0_i32_0 : i32, i32
  }
  func.func @transform_1(%arg0: i32, %arg1: i32) -> (i32, i32) {
    %c1_i32 = arith.constant 1 : i32
    %0 = arith.muli %arg0, %c1_i32 : i32
    %1 = arith.addi %0, %arg1 : i32
    %c0_i32 = arith.constant 0 : i32
    %2 = arith.minsi %1, %c0_i32 : i32
    %c0_i32_0 = arith.constant 0 : i32
    %c0_i32_1 = arith.constant 0 : i32
    return %2, %c0_i32_0 : i32, i32
  }
  func.func @transform_2(%arg0: i32, %arg1: i32) -> (i32, i32, i32, i32) {
    %c0_i32 = arith.constant 0 : i32
    %c0_i32_0 = arith.constant 0 : i32
    %c0_i32_1 = arith.constant 0 : i32
    %c0_i32_2 = arith.constant 0 : i32
    return %arg0, %c0_i32, %c0_i32_0, %c0_i32_1 : i32, i32, i32, i32
  }
}

</mosaic_0001>

<bundles_post_ra>
// kernel: tpu_custom_call.1
= control target key start
LH: loop header
LB: loop body
LE: loop exit
PB: predicated region body
PF: predicated region fallthrough
CT: control target
= control target key end

     0   :  { %7 = vsyncpa [#allocation3], 0  ;;  %s573_s0 = inlined_call_operand.hbm [shape: f32[16,128], index: 0, kind: input, shape index: {}]   ;;  %s574_s1 = inlined_call_operand.hbm [shape: f32[16,128], index: 1, kind: input, shape index: {}]   ;;  %s575_s2 = inlined_call_operand.hbm [shape: f32[1,4,8,128], index: 2, kind: output, shape index: {}]  }
   0x1   :  { %8 = vsyncpa [#allocation6], 0 }
   0x2   :  { %9 = vsyncpa [#allocation4], 0 }
   0x3   :  { %20 = vsyncadd [#allocation3], 256  ;;  %s508_s9 = smov [#allocation2]   ;;  %s436_s13 = scalar_lea.hbm %s573_s0, 256 }
   0x4   :  { %s25_s10 = sshll.u32 %s508_s9, 4  ;;  %p437_p0 = scmp.ne.s32.totalorder %s573_s0, %s436_s13  ;;  %s26_s10 = int_to_ptr.vmem [resolvable:$true] %s25_s10 }
   0x5   :  { %p440_p1 = scmp.lt.u32.totalorder %s436_s13, %s573_s0 }
   0x7   :  { %p442_p2 = pnand %p440_p1, %p437_p0 }
   0x9   :  { %445 = shalt.err (!%p442_p2)
}
   0xa   :  { %s446_s18 = scalar_lea.vmem %s26_s10, 256  ;;  %s450_s19 = scalar_lea.vmem %s26_s10, 512 }
   0xb   :  { %p447_p3 = scmp.ne.s32.totalorder %s26_s10, %s446_s18  ;;  %p451_p4 = scmp.lt.s32.totalorder %s26_s10, %s26_s10 }
   0xc   :  { %p452_p5 = scmp.lt.s32.totalorder %s450_s19, %s446_s18 }
   0xe   :  { %p453_p6 = por %p452_p5, %p451_p4 }
  0x10   :  { %p454_p7 = pnand %p453_p6, %p447_p3 }
  0x12   :  { %457 = shalt.err (!%p454_p7)
}
  0x13   :  { %s509_s20 = smov 128   ;;  %s510_s21 = smov 8  }
  0x14   :  { %31 = dma.hbm_to_vmem [thread:$0]  %s573_s0, 256, %s26_s10, [#allocation3], %s509_s20, %s509_s20, %s510_s21  }
  0x15   :  { %42 = vsyncadd [#allocation6], 256  ;;  %s511_s24 = smov [#allocation5]   ;;  %s458_s28 = scalar_lea.hbm %s574_s1, 256 }
  0x16   :  { %s47_s25 = sshll.u32 %s511_s24, 4  ;;  %p459_p8 = scmp.ne.s32.totalorder %s574_s1, %s458_s28  ;;  %s48_s25 = int_to_ptr.vmem [resolvable:$true] %s47_s25 }
  0x17   :  { %p462_p9 = scmp.lt.u32.totalorder %s458_s28, %s574_s1 }
  0x19   :  { %p464_p10 = pnand %p462_p9, %p459_p8 }
  0x1b   :  { %467 = shalt.err (!%p464_p10)
}
  0x1c   :  { %s468_s5 = scalar_lea.vmem %s48_s25, 256  ;;  %s472_s0 = scalar_lea.vmem %s48_s25, 512 }
  0x1d   :  { %p469_p11 = scmp.ne.s32.totalorder %s48_s25, %s468_s5  ;;  %p473_p12 = scmp.lt.s32.totalorder %s48_s25, %s48_s25 }
  0x1e   :  { %p474_p13 = scmp.lt.s32.totalorder %s472_s0, %s468_s5 }
  0x20   :  { %p475_p0 = por %p474_p13, %p473_p12 }
  0x22   :  { %p476_p1 = pnand %p475_p0, %p469_p11 }
  0x24   :  { %479 = shalt.err (!%p476_p1)
}
  0x25   :  { %53 = dma.hbm_to_vmem [thread:$0]  %s574_s1, 256, %s48_s25, [#allocation6], %s509_s20, %s509_s20, %s510_s21  }
  0x26   :  { %502 = dma.done.wait [#allocation3], 512  }
  0x27   :  { %503 = vsyncadd [#allocation3], 4294966784 }
  0x28   :  { %504 = dma.done.wait [#allocation6], 512  }
  0x29   :  { %505 = vsyncadd [#allocation6], 4294966784  ;;  %v82_v0 = vld [vmem:[#allocation2] sm:$0xff]  ;;  %v83_v1 = vld [vmem:[#allocation2 + $0x8] sm:$0xff]  ;;  %s512_s1 = smov [#allocation7]  }
  0x2a   :  { %v264_v2 = vand.u32 2147483647, %v82_v0  ;;  %v265_v3 = vand.u32 2147483647, %v83_v1  ;;  %v86_v4 = vld [vmem:[#allocation5] sm:$0xff]  ;;  %v87_v5 = vld [vmem:[#allocation5 + $0x8] sm:$0xff] }
  0x2b   :  { %v385_v8 = vadd.f32 %v87_v5, %v86_v4  ;;  %v304_v18 = vmax.f32 %v82_v0, 0.0  ;;  %v308_v19 = vmul.f32 %v86_v4, %v82_v0  ;;  %v305_v22 = vmax.f32 %v83_v1, 0.0  ;;  %s401_s8 = sshll.u32 %s512_s1, 4  ;;  %s402_s8 = int_to_ptr.vmem [resolvable:$true] %s401_s8 }
  0x2c   :  { %v268_v6 = vsub.f32 0.0, %v264_v2  ;;  %v269_v7 = vsub.f32 0.0, %v265_v3  ;;  %v309_v23 = vmul.f32 %v87_v5, %v83_v1  ;;  %vm292_vm0 = vcmp.ge.f32.partialorder %v82_v0, 0.0  ;;  %s480_s9 = scalar_lea.vmem %s402_s8, 512  ;;  %p485_p3 = scmp.lt.s32.totalorder %s402_s8, %s402_s8 }
  0x2d   :  { %395 = vst [vmem:[#allocation7 + $0x18] sm:$0xff] %v385_v8  ;;  %vm293_vm1 = vcmp.ge.f32.partialorder %v83_v1, 0.0  ;;  %v312_v30 = vsub.f32 %v304_v18, %v308_v19  ;;  %p481_p2 = scmp.ne.s32.totalorder %s402_s8, %s480_s9  ;;  %p486_p4 = scmp.lt.s32.totalorder %s480_s9, %s480_s9 }
  0x2e   :  { %v272_v9 = vmul.f32 1.442695, %v268_v6  ;;  %v274_v10 = vmul.f32 1.442695, %v269_v7  ;;  %v313_v34 = vsub.f32 %v305_v22, %v309_v23 }
  0x2f   :  { %p487_p5 = por %p486_p4, %p485_p3 }
  0x30   :  { %424 = vpow2.f32 %v272_v9 }
  0x31   :  { %426 = vpow2.f32 %v274_v10  ;;  %p488_p6 = pnand %p487_p5, %p481_p2 }
  0x3a   :  { %v425_v11 = vpop.eup %424 }
  0x3b   :  { %v427_v12 = vpop.eup %426  ;;  %v280_v13 = vadd.f32 1.0, %v425_v11  ;;  %v319_v15 = vmul.f32 -0.5, %v425_v11  ;;  %v322_v20 = vand.u32 2147483647, %v425_v11 }
  0x3c   :  { %v281_v14 = vadd.f32 1.0, %v427_v12  ;;  %v328_v16 = vmul.f32 -0.5, %v427_v12  ;;  %v331_v24 = vand.u32 2147483647, %v427_v12 }
  0x3d   :  { %428 = vrcp.f32 %v280_v13  ;;  %v320_v17 = vadd.f32 1.0, %v319_v15  ;;  %vm323_vm2 = vcmp.lt.f32.partialorder %v322_v20, 0.0004427343 }
  0x3e   :  { %430 = vrcp.f32 %v281_v14  ;;  %v329_v21 = vadd.f32 1.0, %v328_v16  ;;  %vm332_vm3 = vcmp.lt.f32.partialorder %v331_v24, 0.0004427343 }
  0x3f   :  { %432 = vlog2.f32 %v280_v13  ;;  %v321_v27 = vmul.f32 %v425_v11, %v320_v17 }
  0x40   :  { %434 = vlog2.f32 %v281_v14  ;;  %v330_v31 = vmul.f32 %v427_v12, %v329_v21 }
  0x47   :  { %v429_v25 = vpop.eup %428 }
  0x48   :  { %v431_v26 = vpop.eup %430  ;;  %v296_v28 = vmul.f32 %v429_v25, %v425_v11 }
  0x49   :  { %v433_v29 = vpop.eup %432  ;;  %v297_v32 = vmul.f32 %v431_v26, %v427_v12 }
  0x4a   :  { %v435_v33 = vpop.eup %434  ;;  %v318_v35 = vmul.f32 0.6931472, %v433_v29  ;;  %v300_v36 = vsel %vm292_vm0, %v429_v25, %v296_v28 }
  0x4b   :  { %v327_v37 = vmul.f32 0.6931472, %v435_v33  ;;  %v301_v38 = vsel %vm293_vm1, %v431_v26, %v297_v32  ;;  %v375_v39 = vmul.f32 %v300_v36, %v86_v4 }
  0x4c   :  { %v324_v40 = vsel %vm323_vm2, %v321_v27, %v318_v35  ;;  %v376_v41 = vmul.f32 %v301_v38, %v87_v5  ;;  %v382_v42 = vadd.f32 %v301_v38, %v300_v36 }
  0x4d   :  { %v333_v43 = vsel %vm332_vm3, %v330_v31, %v327_v37  ;;  %v352_v44 = vadd.f32 %v324_v40, %v312_v30 }
  0x4e   :  { %v353_v45 = vadd.f32 %v333_v43, %v313_v34  ;;  %v379_v46 = vadd.f32 %v376_v41, %v375_v39  ;;  %394 = vst [vmem:[#allocation7 + $0x10] sm:$0xff] %v382_v42 }
  0x50   :  { %v372_v47 = vadd.f32 %v353_v45, %v352_v44  ;;  %393 = vst [vmem:[#allocation7 + $0x8] sm:$0xff] %v379_v46 }
  0x52   :  { %392 = vst [vmem:[#allocation7] sm:$0xff] %v372_v47 }
  0x53   :  { %491 = shalt.err (!%p488_p6)
}
  0x54   :  { %s492_s12 = scalar_lea.hbm %s575_s2, 512 }
  0x55   :  { %p493_p7 = scmp.ne.s32.totalorder %s575_s2, %s492_s12  ;;  %p496_p8 = scmp.lt.u32.totalorder %s492_s12, %s575_s2 }
  0x57   :  { %p498_p9 = pnand %p496_p8, %p493_p7 }
  0x59   :  { %501 = shalt.err (!%p498_p9)
}
  0x5a   :  { %407 = dma.vmem_to_hbm [thread:$0]  %s402_s8, 512, %s575_s2, [#allocation4], %s509_s20, %s509_s20, %s510_s21  }
  0x5b   :  { %506 = dma.done.wait [#allocation4], 512  }
  0x5c   :  { %507 = vsyncadd [#allocation4], 4294966784 }
  0x5d   :  { %411 = vsyncpa [#allocation3], 1 }
  0x5e   :  { %412 = vsyncpa [#allocation6], 1 }
  0x5f   :  { %413 = vsyncpa [#allocation4], 1 }

</bundles_post_ra>
